<compile_context>
chip_gen: v7x
topology: tpu7x:2x2x1
jax: 0.10.0
libtpu: 0.0.40
codegen_flags: <defaults>
</compile_context>

<pallas_src>
import jax
import jax.numpy as jnp
import numpy as np
from jax.experimental import pallas as pl
from jax.experimental.pallas import tpu as pltpu


def _round_up(n, m):
    return ((n + m - 1) // m) * m


def _vmem_limit_bytes():
    # Generation-aware VMEM budget: ~3/4 of physical capacity, clamped so a
    # 128 MiB (v5e/v6e) config does not blindly carry over to v7x (64 MiB).
    try:
        cap = int(pltpu.get_tpu_info().vmem_capacity_bytes)
    except Exception:
        cap = 64 * 1024 * 1024
    return int(min(max(cap * 3 // 4, 32 * 1024 * 1024), 96 * 1024 * 1024))


def _make_clip_kernel(inv_p):
    """inv_p: static 1/num_patches (zero-padded patch rows keep the sum exact)."""

    def clip_kernel(patches_ref, w_patch_ref, w_proj_ref, text_t_ref, temp_ref,
                    logits_ref, img_emb_ref, acc_ref):
        p = pl.program_id(1)

        @pl.when(p == 0)
        def _():
            acc_ref[...] = jnp.zeros_like(acc_ref)

        # 1+2) patch-embed -> mean-pool is linear, so sum raw patch rows first
        # (f32 accumulator); the single matmul happens on the last patch tile.
        acc_ref[...] += jnp.sum(patches_ref[...].astype(jnp.float32), axis=1)

        @pl.when(p == pl.num_programs(1) - 1)
        def _():
            pooled = (acc_ref[...] * inv_p).astype(jnp.bfloat16)       # (tb, Dp)
            # 3) patch embedding + projection, batch-tiled so >=8 MXU rows are
            #    used; bf16 operands, f32 accumulation.
            h = jnp.dot(pooled, w_patch_ref[...],
                        preferred_element_type=jnp.float32)            # (tb, H)
            emb = jnp.dot(h.astype(jnp.bfloat16), w_proj_ref[...],
                          preferred_element_type=jnp.float32)          # (tb, E)
            # 4) L2 normalize in f32 (padded columns are exactly zero; matches
            #    torch `x / x.norm(...)` with no eps).
            sumsq = jnp.sum(emb * emb, axis=-1, keepdims=True)
            emb_n = emb * jax.lax.rsqrt(sumsq)
            img_emb_ref[...] = emb_n
            # 5) fold 1/temperature into the rows, then (tb, E) @ (E, T).
            inv_temp = 1.0 / temp_ref[0]
            scaled = (emb_n * inv_temp).astype(jnp.bfloat16)
            logits_ref[...] = jnp.dot(scaled, text_t_ref[...],
                                      preferred_element_type=jnp.float32)

    return clip_kernel


def clip_with_learnable_temperature(pixel_values, text_embeddings,
                                    w_patch, w_proj, temperature,
                                    patch_size=8, tile_b=None, tile_p=None):
    """pixel_values: (B, C, H, W) float32 (NCHW, as in PyTorch).
       text_embeddings: (T, E) float32 (assumed pre-normalized, CLIP usage).
       Returns (logits (B, T) f32, image_embeddings (B, E) f32)."""
    B, C, H, W = pixel_values.shape
    ph = pw = patch_size
    gh, gw = H // ph, W // pw
    P = gh * gw
    patch_dim = C * ph * pw
    hidden = w_patch.shape[1]
    T, E = text_embeddings.shape

    # Lane-pad feature dims to 128 -> lane-dense stores, full MXU columns.
    patch_dim_p = _round_up(patch_dim, 128)
    hidden_p = _round_up(hidden, 128)
    E_p = _round_up(E, 128)
    T_p = _round_up(T, 128)

    # Batch tile (sublane dim of outputs / MXU rows of the tail matmuls).
    if tile_b is None:
        tile_b = min(_round_up(B, 8), 32)
    B_p = _round_up(B, tile_b)
    n_btiles = B_p // tile_b

    # Patch tile: streamed, memory-bound input; bigger tiles amortize the
    # ~0.35 us per-step overhead.
    if tile_p is None:
        tile_p = min(_round_up(P, 8), 256)
    P_p = _round_up(P, tile_p)
    n_ptiles = P_p // tile_p

    # --- im2col glue: NCHW -> (B, P, C*ph*pw) patch matrix, zero padded.
    # TODO(synk): at ViT scale, fuse this extraction into the kernel DMA via an
    # index_map over (b, gh, gw) on the raw pixel_values (memory_space=pl.ANY)
    # instead of materializing a second copy of the patch data in HBM.
    patches = pixel_values.reshape(B, C, gh, ph, gw, pw)
    patches = patches.transpose(0, 2, 4, 1, 3, 5).reshape(B, P, patch_dim)
    pads = ((0, B_p - B), (0, P_p - P), (0, patch_dim_p - patch_dim))
    if any(hi for _, hi in pads):
        patches = jnp.pad(patches, pads)
    patches = patches.astype(jnp.bfloat16)

    w_patch_p = jnp.pad(w_patch, ((0, patch_dim_p - patch_dim),
                                  (0, hidden_p - hidden))).astype(jnp.bfloat16)
    w_proj_p = jnp.pad(w_proj, ((0, hidden_p - hidden),
                                (0, E_p - E))).astype(jnp.bfloat16)
    # Pre-transpose text so the kernel does a plain (tb, E) @ (E, T) matmul.
    text_t_p = jnp.pad(text_embeddings.T, ((0, E_p - E),
                                           (0, T_p - T))).astype(jnp.bfloat16)
    temp = jnp.asarray(temperature, jnp.float32).reshape(1)

    flops = int(B_p * P_p * patch_dim_p
                + 2 * B_p * (patch_dim_p * hidden_p + hidden_p * E_p + E_p * T_p))
    bytes_accessed = int(patches.size * 2 + w_patch_p.size * 2 + w_proj_p.size * 2
                         + text_t_p.size * 2 + B_p * (T_p + E_p) * 4)

    kernel = _make_clip_kernel(1.0 / float(P))

    # Resident (constant block index) operands: single buffer, no wasted VMEM.
    resident = dict(pipeline_mode=pl.Buffered(1))

    logits_p, img_emb_p = pl.pallas_call(
        kernel,
        out_shape=(jax.ShapeDtypeStruct((B_p, T_p), jnp.float32),
                   jax.ShapeDtypeStruct((B_p, E_p), jnp.float32)),
        grid_spec=pltpu.PrefetchScalarGridSpec(
            num_scalar_prefetch=0,
            grid=(n_btiles, n_ptiles),            # reduction (patch) axis last
            in_specs=[
                # streamed patch tiles (double-buffered by default)
                pl.BlockSpec((tile_b, tile_p, patch_dim_p),
                             lambda b, p: (b, p, 0)),
                pl.BlockSpec((patch_dim_p, hidden_p),
                             lambda b, p: (0, 0), **resident),
                pl.BlockSpec((hidden_p, E_p),
                             lambda b, p: (0, 0), **resident),
                # TODO(synk): for very large T (zero-shot with thousands of
                # classes) add a T grid axis / separate tiled matmul instead of
                # keeping the whole (E_p, T_p) text matrix resident.
                pl.BlockSpec((E_p, T_p),
                             lambda b, p: (0, 0), **resident),
                # learnable temperature scalar in SMEM
                pl.BlockSpec(memory_space=pltpu.MemorySpace.SMEM),
            ],
            out_specs=(
                pl.BlockSpec((tile_b, T_p), lambda b, p: (b, 0)),
                pl.BlockSpec((tile_b, E_p), lambda b, p: (b, 0)),
            ),
            scratch_shapes=[pltpu.VMEM((tile_b, patch_dim_p), jnp.float32)],
        ),
        compiler_params=pltpu.CompilerParams(
            dimension_semantics=("parallel", "arbitrary"),
            vmem_limit_bytes=_vmem_limit_bytes(),
        ),
        cost_estimate=pl.CostEstimate(
            flops=flops, transcendentals=B_p, bytes_accessed=bytes_accessed),
    )(patches, w_patch_p, w_proj_p, text_t_p, temp)

    return logits_p[:B, :T], img_emb_p[:B, :E]


if __name__ == "__main__":
    # Small, forward-consistent shapes.
    B, C, H, W = 2, 4, 16, 16          # image_inputs["pixel_values"]
    patch_size = 8
    hidden = 32                        # synthetic vision-tower width
    E = 32                             # joint embedding dim
    T = 8                              # number of text embeddings

    key = jax.random.PRNGKey(0)
    k_px, k_txt, k_wp, k_wj = jax.random.split(key, 4)

    pixel_values = jax.random.normal(k_px, (B, C, H, W), jnp.float32)
    text_embeddings = jax.random.normal(k_txt, (T, E), jnp.float32)
    text_embeddings = text_embeddings / jnp.linalg.norm(
        text_embeddings, axis=-1, keepdims=True)

    patch_dim = C * patch_size * patch_size
    # deterministic synthetic "clip_model" weights
    w_patch = jax.random.normal(k_wp, (patch_dim, hidden), jnp.float32) * 0.02
    w_proj = jax.random.normal(k_wj, (hidden, E), jnp.float32) * 0.02
    temperature = 0.3                  # nn.Parameter(torch.tensor(0.3))

    # TODO(synk): the full CLIP ViT image tower (attention blocks, LayerNorms)
    # is replaced by the synthetic patch-embed + mean-pool + proj tower above.
    logits, img_emb = clip_with_learnable_temperature(
        pixel_values, text_embeddings, w_patch, w_proj, temperature,
        patch_size=patch_size)
    jax.block_until_ready(logits)

    # pure-JAX f32 reference (tolerance-asserted before any benchmarking).
    gh, gw = H // patch_size, W // patch_size
    P = gh * gw
    pr = pixel_values.reshape(B, C, gh, patch_size, gw, patch_size)
    pr = pr.transpose(0, 2, 4, 1, 3, 5).reshape(B, P, patch_dim)
    emb_ref = jnp.mean(pr @ w_patch, axis=1) @ w_proj
    emb_ref = emb_ref / jnp.linalg.norm(emb_ref, axis=-1, keepdims=True)
    logits_ref = emb_ref @ text_embeddings.T / temperature
    np.testing.assert_allclose(np.asarray(img_emb), np.asarray(emb_ref),
                               rtol=1e-1, atol=1e-1)
    np.testing.assert_allclose(np.asarray(logits), np.asarray(logits_ref),
                               rtol=1e-1, atol=1e-1)

    # mirrors the `print(image_embeddings)` side effect in the torch forward
    print(img_emb)
    print("KERNEL_OK")
</pallas_src>

<mosaic_0001>
module attributes {stable_mosaic.version = 11 : i64} {
  func.func @clip_kernel(%arg0: i32, %arg1: i32, %arg2: memref<8x8x256xbf16, #tpu.memory_space<vmem>>, %arg3: memref<256x128xbf16, #tpu.memory_space<vmem>>, %arg4: memref<128x128xbf16, #tpu.memory_space<vmem>>, %arg5: memref<128x128xbf16, #tpu.memory_space<vmem>>, %arg6: memref<1xf32, #tpu.memory_space<smem>>, %arg7: memref<8x128xf32, #tpu.memory_space<vmem>>, %arg8: memref<8x128xf32, #tpu.memory_space<vmem>>, %arg9: memref<8x256xf32, #tpu.memory_space<vmem>>) attributes {dimension_semantics = [#tpu.dimension_semantics<parallel>, #tpu.dimension_semantics<arbitrary>], iteration_bounds = array<i64: 1, 1>, scalar_prefetch = 0 : i64, scratch_operands = 1 : i64, tpu.core_type = #tpu.core_type<tc>, window_params = [{transform_indices = @transform_0, window_bounds = array<i64: 8, 8, 256>}, {pipeline_mode = #tpu.pipeline_mode<synchronous>, transform_indices = @transform_1, window_bounds = array<i64: 256, 128>}, {pipeline_mode = #tpu.pipeline_mode<synchronous>, transform_indices = @transform_2, window_bounds = array<i64: 128, 128>}, {pipeline_mode = #tpu.pipeline_mode<synchronous>, transform_indices = @transform_3, window_bounds = array<i64: 128, 128>}, {transform_indices = @transform_4, window_bounds = array<i64: 1>}, {transform_indices = @transform_5, window_bounds = array<i64: 8, 128>}, {transform_indices = @transform_6, window_bounds = array<i64: 8, 128>}]} {
    %c0_i32 = arith.constant 0 : i32
    %0 = arith.cmpi eq, %arg1, %c0_i32 : i32
    %1 = arith.extui %0 : i1 to i32
    %c0_i32_0 = arith.constant 0 : i32
    %2 = arith.cmpi ne, %1, %c0_i32_0 : i32
    scf.if %2 {
      %cst_9 = arith.constant 0.000000e+00 : f32
      %12 = vector.broadcast %cst_9 : f32 to vector<8x256xf32>
      %c0_10 = arith.constant 0 : index
      %c0_11 = arith.constant 0 : index
      %13 = vector.load %arg9[%c0_10, %c0_11] : memref<8x256xf32, #tpu.memory_space<vmem>>, vector<8x256xf32>
      tpu.vector_store %arg9[%c0_10, %c0_11], %12 {strides = array<i32>} : memref<8x256xf32, #tpu.memory_space<vmem>>, vector<8x256xf32>,
    } else {
    }
    %c0 = arith.constant 0 : index
    %c0_1 = arith.constant 0 : index
    %3 = vector.load %arg9[%c0, %c0_1] : memref<8x256xf32, #tpu.memory_space<vmem>>, vector<8x256xf32>
    %c0_2 = arith.constant 0 : index
    %c0_3 = arith.constant 0 : index
    %c0_4 = arith.constant 0 : index
    %4 = vector.load %arg2[%c0_2, %c0_3, %c0_4] : memref<8x8x256xbf16, #tpu.memory_space<vmem>>, vector<8x8x256xbf16>
    %5 = arith.extf %4 : vector<8x8x256xbf16> to vector<8x8x256xf32>
    %cst = arith.constant dense<0.000000e+00> : vector<8x256xf32>
    %6 = vector.multi_reduction <add>, %5, %cst [1] : vector<8x8x256xf32> to vector<8x256xf32>
    %7 = arith.addf %3, %6 : vector<8x256xf32>
    %c0_5 = arith.constant 0 : index
    %c0_6 = arith.constant 0 : index
    %8 = vector.load %arg9[%c0_5, %c0_6] : memref<8x256xf32, #tpu.memory_space<vmem>>, vector<8x256xf32>
    tpu.vector_store %arg9[%c0_5, %c0_6], %7 {strides = array<i32>} : memref<8x256xf32, #tpu.memory_space<vmem>>, vector<8x256xf32>,
    %c0_i32_7 = arith.constant 0 : i32
    %9 = arith.cmpi eq, %arg1, %c0_i32_7 : i32
    %10 = arith.extui %9 : i1 to i32
    %c0_i32_8 = arith.constant 0 : i32
    %11 = arith.cmpi ne, %10, %c0_i32_8 : i32
    scf.if %11 {
      %c0_9 = arith.constant 0 : index
      %c0_10 = arith.constant 0 : index
      %12 = vector.load %arg9[%c0_9, %c0_10] : memref<8x256xf32, #tpu.memory_space<vmem>>, vector<8x256xf32>
      %cst_11 = arith.constant 2.500000e-01 : f32
      %13 = vector.broadcast %cst_11 : f32 to vector<8x256xf32>
      %14 = arith.mulf %12, %13 : vector<8x256xf32>
      %15 = arith.truncf %14 : vector<8x256xf32> to vector<8x256xbf16>
      %c0_12 = arith.constant 0 : index
      %c0_13 = arith.constant 0 : index
      %16 = vector.load %arg3[%c0_12, %c0_13] : memref<256x128xbf16, #tpu.memory_space<vmem>>, vector<256x128xbf16>
      %cst_14 = arith.constant dense<0.000000e+00> : vector<8x128xf32>
      %17 = tpu.matmul %15, %16, %cst_14 {dimension_numbers = #tpu.dot_dimension_numbers<[1], [0], [0], [1], [0, 0, 1, 1], [], []>} : vector<8x256xbf16>, vector<256x128xbf16>, vector<8x128xf32> -> vector<8x128xf32>
      %18 = arith.truncf %17 : vector<8x128xf32> to vector<8x128xbf16>
      %c0_15 = arith.constant 0 : index
      %c0_16 = arith.constant 0 : index
      %19 = vector.load %arg4[%c0_15, %c0_16] : memref<128x128xbf16, #tpu.memory_space<vmem>>, vector<128x128xbf16>
      %cst_17 = arith.constant dense<0.000000e+00> : vector<8x128xf32>
      %20 = tpu.matmul %18, %19, %cst_17 {dimension_numbers = #tpu.dot_dimension_numbers<[1], [0], [0], [1], [0, 0, 1, 1], [], []>} : vector<8x128xbf16>, vector<128x128xbf16>, vector<8x128xf32> -> vector<8x128xf32>
      %21 = arith.mulf %20, %20 : vector<8x128xf32>
      %cst_18 = arith.constant dense<0.000000e+00> : vector<8xf32>
      %22 = vector.multi_reduction <add>, %21, %cst_18 [1] : vector<8x128xf32> to vector<8xf32>
      %23 = vector.shape_cast %22 : vector<8xf32> to vector<8x1xf32>
      %24 = math.rsqrt %23 : vector<8x1xf32>
      %25 = vector.broadcast %24 : vector<8x1xf32> to vector<8x128xf32>
      %26 = arith.mulf %20, %25 : vector<8x128xf32>
      %c0_19 = arith.constant 0 : index
      %c0_20 = arith.constant 0 : index
      %27 = vector.load %arg8[%c0_19, %c0_20] : memref<8x128xf32, #tpu.memory_space<vmem>>, vector<8x128xf32>
      tpu.vector_store %arg8[%c0_19, %c0_20], %26 {strides = array<i32>} : memref<8x128xf32, #tpu.memory_space<vmem>>, vector<8x128xf32>,
      %c0_21 = arith.constant 0 : index
      %28 = memref.load %arg6[%c0_21] : memref<1xf32, #tpu.memory_space<smem>>
      %cst_22 = arith.constant 1.000000e+00 : f32
      %29 = arith.divf %cst_22, %28 : f32
      %30 = vector.broadcast %29 : f32 to vector<8x128xf32>
      %31 = arith.mulf %26, %30 : vector<8x128xf32>
      %32 = arith.truncf %31 : vector<8x128xf32> to vector<8x128xbf16>
      %c0_23 = arith.constant 0 : index
      %c0_24 = arith.constant 0 : index
      %33 = vector.load %arg5[%c0_23, %c0_24] : memref<128x128xbf16, #tpu.memory_space<vmem>>, vector<128x128xbf16>
      %cst_25 = arith.constant dense<0.000000e+00> : vector<8x128xf32>
      %34 = tpu.matmul %32, %33, %cst_25 {dimension_numbers = #tpu.dot_dimension_numbers<[1], [0], [0], [1], [0, 0, 1, 1], [], []>} : vector<8x128xbf16>, vector<128x128xbf16>, vector<8x128xf32> -> vector<8x128xf32>
      %c0_26 = arith.constant 0 : index
      %c0_27 = arith.constant 0 : index
      %35 = vector.load %arg7[%c0_26, %c0_27] : memref<8x128xf32, #tpu.memory_space<vmem>>, vector<8x128xf32>
      tpu.vector_store %arg7[%c0_26, %c0_27], %34 {strides = array<i32>} : memref<8x128xf32, #tpu.memory_space<vmem>>, vector<8x128xf32>,
    } else {
    }
    return
  }
  func.func @transform_0(%arg0: i32, %arg1: i32) -> (i32, i32, i32) {
    %c0_i32 = arith.constant 0 : i32
    %c0_i32_0 = arith.constant 0 : i32
    return %arg0, %arg1, %c0_i32 : i32, i32, i32
  }
  func.func @transform_1(%arg0: i32, %arg1: i32) -> (i32, i32) {
    %c0_i32 = arith.constant 0 : i32
    %c0_i32_0 = arith.constant 0 : i32
    %c0_i32_1 = arith.constant 0 : i32
    return %c0_i32, %c0_i32_0 : i32, i32
  }
  func.func @transform_2(%arg0: i32, %arg1: i32) -> (i32, i32) {
    %c0_i32 = arith.constant 0 : i32
    %c0_i32_0 = arith.constant 0 : i32
    %c0_i32_1 = arith.constant 0 : i32
    return %c0_i32, %c0_i32_0 : i32, i32
  }
  func.func @transform_3(%arg0: i32, %arg1: i32) -> (i32, i32) {
    %c0_i32 = arith.constant 0 : i32
    %c0_i32_0 = arith.constant 0 : i32
    %c0_i32_1 = arith.constant 0 : i32
    return %c0_i32, %c0_i32_0 : i32, i32
  }
  func.func @transform_4(%arg0: i32, %arg1: i32) -> i32 {
    %c0_i32 = arith.constant 0 : i32
    %c0_i32_0 = arith.constant 0 : i32
    return %c0_i32 : i32
  }
  func.func @transform_5(%arg0: i32, %arg1: i32) -> (i32, i32) {
    %c0_i32 = arith.constant 0 : i32
    %c0_i32_0 = arith.constant 0 : i32
    return %arg0, %c0_i32 : i32, i32
  }
  func.func @transform_6(%arg0: i32, %arg1: i32) -> (i32, i32) {
    %c0_i32 = arith.constant 0 : i32
    %c0_i32_0 = arith.constant 0 : i32
    return %arg0, %c0_i32 : i32, i32
  }
}

</mosaic_0001>

<bundles_post_ra>
// kernel: tpu_custom_call.1
= control target key start
LH: loop header
LB: loop body
LE: loop exit
PB: predicated region body
PF: predicated region fallthrough
CT: control target
= control target key end

     0   :  { %13 = vsyncpa [#allocation5], 0  ;;  %s1221_s0 = inlined_call_operand.hbm [shape: bf16[8,8,256], index: 0, kind: input, shape index: {}]   ;;  %s1222_s1 = inlined_call_operand.hbm [shape: bf16[256,128], index: 1, kind: input, shape index: {}]   ;;  %s1223_s2 = inlined_call_operand.hbm [shape: bf16[128,128], index: 2, kind: input, shape index: {}]   ;;  %s1224_s3 = inlined_call_operand.hbm [shape: bf16[128,128], index: 3, kind: input, shape index: {}]   ;;  %s1225_s4 = inlined_call_operand.<no memory space> [shape: f32[1], index: 4, kind: input, shape index: {}]   ;;  %s1226_s5 = inlined_call_operand.hbm [shape: f32[8,128], index: 5, kind: output, shape index: {0}]   ;;  %s1227_s6 = inlined_call_operand.hbm [shape: f32[8,128], index: 6, kind: output, shape index: {1}]  }
   0x1   :  { %14 = vsyncpa [#allocation8], 0 }
   0x2   :  { %15 = vsyncpa [#allocation11], 0 }
   0x3   :  { %16 = vsyncpa [#allocation6], 0 }
   0x4   :  { %17 = vsyncpa [#allocation14], 0  ;;  %s987_s21 = smov [#allocation7]   ;;  %s845_s25 = scalar_lea.hbm %s1222_s1, 2048 }
   0x5   :  { %s35_s22 = sshll.u32 %s987_s21, 4  ;;  %p846_p0 = scmp.ne.s32.totalorder %s1222_s1, %s845_s25  ;;  %s36_s22 = int_to_ptr.vmem [resolvable:$true] %s35_s22 }
   0x6   :  { %p849_p1 = scmp.lt.u32.totalorder %s845_s25, %s1222_s1 }
   0x8   :  { %p851_p2 = pnand %p849_p1, %p846_p0 }
   0xa   :  { %854 = shalt.err (!%p851_p2)
}
   0xb   :  { %s855_s30 = scalar_lea.vmem %s36_s22, 2048  ;;  %p860_p4 = scmp.lt.s32.totalorder %s36_s22, %s36_s22 }
   0xc   :  { %p856_p3 = scmp.ne.s32.totalorder %s36_s22, %s855_s30  ;;  %p861_p5 = scmp.lt.s32.totalorder %s855_s30, %s855_s30 }
   0xe   :  { %p862_p6 = por %p861_p5, %p860_p4 }
  0x10   :  { %p863_p7 = pnand %p862_p6, %p856_p3 }
  0x12   :  { %866 = shalt.err (!%p863_p7)
}
  0x13   :  { %s988_s7 = smov 64   ;;  %s989_s8 = smov 4  }
  0x14   :  { %41 = dma.hbm_to_vmem [thread:$0]  %s1222_s1, 2048, %s36_s22, [#allocation8], %s988_s7, %s988_s7, %s989_s8  }
  0x15   :  { %s990_s11 = smov [#allocation4]   ;;  %s867_s15 = scalar_lea.hbm %s1221_s0, 1024 }
  0x16   :  { %s23_s12 = sshll.u32 %s990_s11, 4  ;;  %p868_p8 = scmp.ne.s32.totalorder %s1221_s0, %s867_s15  ;;  %s24_s12 = int_to_ptr.vmem [resolvable:$true] %s23_s12 }
  0x17   :  { %p871_p9 = scmp.lt.u32.totalorder %s867_s15, %s1221_s0 }
  0x19   :  { %p873_p10 = pnand %p871_p9, %p868_p8 }
  0x1b   :  { %876 = shalt.err (!%p873_p10)
}
  0x1c   :  { %s877_s20 = scalar_lea.vmem %s24_s12, 1024  ;;  %p882_p12 = scmp.lt.s32.totalorder %s24_s12, %s24_s12 }
  0x1d   :  { %p878_p11 = scmp.ne.s32.totalorder %s24_s12, %s877_s20  ;;  %p883_p13 = scmp.lt.s32.totalorder %s877_s20, %s877_s20 }
  0x1f   :  { %p884_p0 = por %p883_p13, %p882_p12 }
  0x21   :  { %p885_p1 = pnand %p884_p0, %p878_p11 }
  0x23   :  { %888 = shalt.err (!%p885_p1)
}
  0x24   :  { %s991_s1 = smov 128   ;;  %s992_s21 = smov 8  }
  0x25   :  { %29 = dma.hbm_to_vmem [thread:$0]  %s1221_s0, 1024, %s24_s12, [#allocation5], %s991_s1, %s991_s1, %s992_s21  }
  0x26   :  { %s993_s24 = smov [#allocation9]   ;;  %s994_s26 = smov [#allocation10]  }
  0x27   :  { %s47_s25 = sshll.u32 %s993_s24, 4  ;;  %s59_s27 = sshll.u32 %s994_s26, 4  ;;  %s48_s25 = int_to_ptr.vmem [resolvable:$true] %s47_s25  ;;  %s1061_s27 = int_to_ptr.vmem [resolvable:$true] %s59_s27 }
  0x28   :  { %s889_s30 = scalar_lea.hbm %s1223_s2, 1024 }
  0x29   :  { %p890_p2 = scmp.ne.s32.totalorder %s1223_s2, %s889_s30  ;;  %p893_p3 = scmp.lt.u32.totalorder %s889_s30, %s1223_s2 }
  0x2b   :  { %p895_p4 = pnand %p893_p3, %p890_p2 }
  0x2d   :  { %898 = shalt.err (!%p895_p4)
}
  0x2e   :  { %s899_s0 = scalar_lea.vmem %s48_s25, 1024  ;;  %p904_p6 = scmp.lt.s32.totalorder %s48_s25, %s48_s25 }
  0x2f   :  { %p900_p5 = scmp.ne.s32.totalorder %s48_s25, %s899_s0  ;;  %p905_p7 = scmp.lt.s32.totalorder %s899_s0, %s899_s0 }
  0x31   :  { %p906_p8 = por %p905_p7, %p904_p6 }
  0x33   :  { %p907_p9 = pnand %p906_p8, %p900_p5 }
  0x35   :  { %910 = shalt.err (!%p907_p9)
}
  0x36   :  { %53 = dma.hbm_to_vmem [thread:$0]  %s1223_s2, 1024, %s48_s25, [#allocation8], %s988_s7, %s988_s7, %s989_s8  }
  0x37   :  { %s911_s17 = scalar_lea.hbm %s1224_s3, 1024 }
  0x38   :  { %p912_p10 = scmp.ne.s32.totalorder %s1224_s3, %s911_s17  ;;  %p915_p11 = scmp.lt.u32.totalorder %s911_s17, %s1224_s3 }
  0x3a   :  { %p917_p12 = pnand %p915_p11, %p912_p10 }
  0x3c   :  { %920 = shalt.err (!%p917_p12)
}
  0x3d   :  { %s921_s21 = scalar_lea.vmem %s1061_s27, 1024  ;;  %p926_p0 = scmp.lt.s32.totalorder %s1061_s27, %s1061_s27 }
  0x3e   :  { %p922_p13 = scmp.ne.s32.totalorder %s1061_s27, %s921_s21  ;;  %p927_p1 = scmp.lt.s32.totalorder %s921_s21, %s921_s21 }
  0x40   :  { %p928_p2 = por %p927_p1, %p926_p0 }
  0x42   :  { %p929_p3 = pnand %p928_p2, %p922_p13 }
  0x44   :  { %932 = shalt.err (!%p929_p3)
}
  0x45   :  { %65 = dma.hbm_to_vmem [thread:$0]  %s1224_s3, 1024, %s1061_s27, [#allocation11], %s988_s7, %s988_s7, %s989_s8  }
  0x46   :  { %977 = dma.done.wait [#allocation5], 1024  }
  0x47   :  { %978 = vsyncadd [#allocation5], 4294966272 }
  0x48   :  { %979 = dma.done.wait [#allocation8], 3072  }
  0x49   :  { %980 = vsyncadd [#allocation8], 4294964224 }
  0x4a   :  { %981 = dma.done.wait [#allocation11], 1024  }
  0x4b   :  { %982 = vsyncadd [#allocation11], 4294966272  ;;  %v995_v0 = vmov 0.0   ;;  %v809_v1 = vld [vmem:[#allocation7 + $0x40] sm:$0xff]   ;;  %v811_v3 = vld [vmem:[#allocation7 + $0x48] sm:$0xff]   ;;  %vm225_vm0 = vcmask 1041409  }
  0x4c   :  { %755 = vmatprep.subr.bf16.mxu1 %v995_v0  ;;  %v810_v2 = vld [vmem:[#allocation7] sm:$0xff]   ;;  %715 = vmatprep.subr.bf16.mxu0 %v809_v1  ;;  %v812_v4 = vld [vmem:[#allocation7 + $0x8] sm:$0xff]   ;;  %v813_v5 = vld [vmem:[#allocation7 + $0x50] sm:$0xff]   ;;  %vm227_vm1 = vcmask 1042434   ;;  %vm229_vm2 = vcmask 1043459   ;;  %vm231_vm3 = vcmask 1044484  }
  0x4d   :  { %716 = vmatpush3.bf16.msra.mxu0 %v810_v2  ;;  %v814_v6 = vld [vmem:[#allocation7 + $0x10] sm:$0xff]   ;;  %v815_v7 = vld [vmem:[#allocation7 + $0x58] sm:$0xff]   ;;  %v817_v9 = vld [vmem:[#allocation7 + $0x60] sm:$0xff]   ;;  %vm233_vm4 = vcmask 1045509   ;;  %vm235_vm5 = vcmask 1046534   ;;  %vm237_vm6 = vcmask 1047559  }
  0x4e   :  { %717 = vmatprep.subr.bf16.mxu0 %v811_v3  ;;  %v816_v8 = vld [vmem:[#allocation7 + $0x18] sm:$0xff]   ;;  %v818_v10 = vld [vmem:[#allocation7 + $0x20] sm:$0xff]   ;;  %v819_v11 = vld [vmem:[#allocation7 + $0x68] sm:$0xff]   ;;  %vm996_vm7 = vmmov 0   ;;  %s997_s8 = smov [#allocation13]  }
  0x4f   :  { %v1099_v12 = vld [vmem:[#allocation4] sm:$0xff]  ;;  %v1101_v13 = vld [vmem:[#allocation4 + $0x8] sm:$0xff]  ;;  %v1103_v14 = vld [vmem:[#allocation4 + $0x10] sm:$0xff]  ;;  %771 = vmatprep.mubr.msk.bf16.mxu1 %vm996_vm7, %v995_v0  ;;  %s668_s23 = sshll.u32 %s997_s8, 4  ;;  %s669_s23 = int_to_ptr.vmem [resolvable:$true] %s668_s23 }
  0x50   :  { %v820_v15 = vld [vmem:[#allocation7 + $0x28] sm:$0xff]   ;;  %v1105_v16 = vld [vmem:[#allocation4 + $0x18] sm:$0xff]  ;;  %v1107_v17 = vld [vmem:[#allocation4 + $0x20] sm:$0xff]  ;;  %v97_v19 = vunpack.c.l.bf16 %v1099_v12  ;;  %v98_v20 = vunpack.c.h.bf16 %v1099_v12  ;;  %v99_v21 = vunpack.c.l.bf16 %v1101_v13  ;;  %v100_v22 = vunpack.c.h.bf16 %v1101_v13  ;;  %s933_s24 = scalar_lea.vmem %s669_s23, 128  ;;  %p938_p5 = scmp.lt.s32.totalorder %s669_s23, %s669_s23 }
  0x51   :  { %718 = vmatpush3.bf16.msra.mxu0 %v812_v4  ;;  %v1109_v18 = vld [vmem:[#allocation4 + $0x28] sm:$0xff]  ;;  %v821_v23 = vld [vmem:[#allocation7 + $0x70] sm:$0xff]   ;;  %v1117_v25 = vld [vmem:[#allocation4 + $0x38] sm:$0xff]  ;;  %v101_v26 = vunpack.c.l.bf16 %v1103_v14  ;;  %v102_v27 = vunpack.c.h.bf16 %v1103_v14  ;;  %v103_v28 = vunpack.c.l.bf16 %v1105_v16  ;;  %v104_v29 = vunpack.c.h.bf16 %v1105_v16  ;;  %p934_p4 = scmp.ne.s32.totalorder %s669_s23, %s933_s24  ;;  %p939_p6 = scmp.lt.s32.totalorder %s933_s24, %s933_s24 }
  0x52   :  { %719 = vmatprep.subr.bf16.mxu0 %v813_v5  ;;  %v1115_v24 = vld [vmem:[#allocation4 + $0x30] sm:$0xff]  ;;  %v105_v30 = vunpack.c.l.bf16 %v1107_v17  ;;  %v106_v31 = vunpack.c.h.bf16 %v1107_v17  ;;  %v107_v32 = vunpack.c.l.bf16 %v1109_v18  ;;  %v108_v33 = vunpack.c.h.bf16 %v1109_v18  ;;  %v825_v34 = vld [vmem:[#allocation9] sm:$0xff]   ;;  %v826_v39 = vld [vmem:[#allocation9 + $0x8] sm:$0xff]  }
  0x53   :  { %v109_v35 = vunpack.c.l.bf16 %v1115_v24  ;;  %v110_v36 = vunpack.c.h.bf16 %v1115_v24  ;;  %v111_v37 = vunpack.c.l.bf16 %v1117_v25  ;;  %v112_v38 = vunpack.c.h.bf16 %v1117_v25  ;;  %756 = vmatpush3.bf16.msra.mxu1 %v825_v34  ;;  %v822_v44 = vld [vmem:[#allocation7 + $0x30] sm:$0xff]   ;;  %v823_v45 = vld [vmem:[#allocation7 + $0x78] sm:$0xff]   ;;  %p940_p7 = por %p939_p6, %p938_p5 }
  0x54   :  { %v119_v40 = vrot.slane %v98_v20, 4  ;;  %v131_v41 = vrot.slane %v100_v22, 4  ;;  %v143_v42 = vrot.slane %v102_v27, 4  ;;  %v155_v43 = vrot.slane %v104_v29, 4  ;;  %757 = vmatprep.subr.bf16.mxu1 %v995_v0  ;;  %v827_v58 = vld [vmem:[#allocation9 + $0x10] sm:$0xff]   ;;  %v824_v63 = vld [vmem:[#allocation7 + $0x38] sm:$0xff]  }
  0x55   :  { %720 = vmatpush3.bf16.msra.mxu0 %v814_v6  ;;  %v167_v46 = vrot.slane %v106_v31, 4  ;;  %v179_v47 = vrot.slane %v108_v33, 4  ;;  %v191_v48 = vrot.slane %v110_v36, 4  ;;  %v203_v49 = vrot.slane %v112_v38, 4  ;;  %p941_p8 = pnand %p940_p7, %p934_p4 }
  0x56   :  { %721 = vmatprep.subr.bf16.mxu0 %v815_v7  ;;  %v120_v50 = vadd.f32 %v119_v40, %v98_v20  ;;  %v132_v51 = vadd.f32 %v131_v41, %v100_v22  ;;  %v144_v52 = vadd.f32 %v143_v42, %v102_v27  ;;  %v156_v53 = vadd.f32 %v155_v43, %v104_v29 }
  0x57   :  { %v168_v54 = vadd.f32 %v167_v46, %v106_v31  ;;  %v180_v55 = vadd.f32 %v179_v47, %v108_v33  ;;  %v192_v56 = vadd.f32 %v191_v48, %v110_v36  ;;  %v204_v57 = vadd.f32 %v203_v49, %v112_v38  ;;  %758 = vmatpush3.bf16.msra.mxu1 %v826_v39 }
  0x58   :  { %v121_v59 = vrot.slane %v120_v50, 2  ;;  %v133_v60 = vrot.slane %v132_v51, 2  ;;  %v145_v61 = vrot.slane %v144_v52, 2  ;;  %v157_v62 = vrot.slane %v156_v53, 2  ;;  %759 = vmatprep.subr.bf16.mxu1 %v995_v0 }
  0x59   :  { %722 = vmatpush3.bf16.msra.mxu0 %v816_v8  ;;  %v169_v1 = vrot.slane %v168_v54, 2  ;;  %v181_v2 = vrot.slane %v180_v55, 2  ;;  %v193_v3 = vrot.slane %v192_v56, 2  ;;  %v205_v4 = vrot.slane %v204_v57, 2 }
  0x5a   :  { %723 = vmatprep.subr.bf16.mxu0 %v817_v9  ;;  %v122_v5 = vadd.f32 %v121_v59, %v120_v50  ;;  %v134_v6 = vadd.f32 %v133_v60, %v132_v51  ;;  %v146_v7 = vadd.f32 %v145_v61, %v144_v52  ;;  %v158_v8 = vadd.f32 %v157_v62, %v156_v53  ;;  %v828_v9 = vld [vmem:[#allocation9 + $0x18] sm:$0xff]   ;;  %v829_v50 = vld [vmem:[#allocation9 + $0x20] sm:$0xff]  }
  0x5b   :  { %v206_v20 = vadd.f32 %v205_v4, %v204_v57  ;;  %760 = vmatpush3.bf16.msra.mxu1 %v827_v58  ;;  %v113_v47 = vrot.slane %v97_v19, 4  ;;  %v125_v48 = vrot.slane %v99_v21, 4  ;;  %v137_v49 = vrot.slane %v101_v26, 4 }
  0x5c   :  { %v123_v22 = vrot.slane %v122_v5, 1  ;;  %v147_v27 = vrot.slane %v146_v7, 1  ;;  %v159_v29 = vrot.slane %v158_v8, 1  ;;  %761 = vmatprep.subr.bf16.mxu1 %v995_v0  ;;  %v149_v52 = vrot.slane %v103_v28, 4 }
  0x5d   :  { %724 = vmatpush3.bf16.msra.mxu0 %v818_v10  ;;  %v170_v10 = vadd.f32 %v169_v1, %v168_v54  ;;  %v207_v36 = vrot.slane %v206_v20, 1  ;;  %v161_v53 = vrot.slane %v105_v30, 4  ;;  %v173_v54 = vrot.slane %v107_v32, 4 }
  0x5e   :  { %725 = vmatprep.subr.bf16.mxu0 %v819_v11  ;;  %v182_v11 = vadd.f32 %v181_v2, %v180_v55  ;;  %v124_v38 = vadd.f32 %v123_v22, %v122_v5  ;;  %v148_v40 = vadd.f32 %v147_v27, %v146_v7  ;;  %v160_v41 = vadd.f32 %v159_v29, %v158_v8 }
  0x5f   :  { %v171_v31 = vrot.slane %v170_v10, 1  ;;  %762 = vmatpush3.bf16.msra.mxu1 %v828_v9  ;;  %v126_v57 = vadd.f32 %v125_v48, %v99_v21  ;;  %v138_v58 = vadd.f32 %v137_v49, %v101_v26  ;;  %v150_v60 = vadd.f32 %v149_v52, %v103_v28  ;;  %v830_v21 = vld [vmem:[#allocation9 + $0x28] sm:$0xff]   ;;  %v831_v9 = vld [vmem:[#allocation9 + $0x30] sm:$0xff]   ;;  %v832_v52 = vld [vmem:[#allocation9 + $0x38] sm:$0xff]  }
  0x60   :  { %v183_v33 = vrot.slane %v182_v11, 1  ;;  %763 = vmatprep.subr.bf16.mxu1 %v995_v0  ;;  %v162_v61 = vadd.f32 %v161_v53, %v105_v30  ;;  %v174_v62 = vadd.f32 %v173_v54, %v107_v32  ;;  %v185_v8 = vrot.slane %v109_v35, 4 }
  0x61   :  { %726 = vmatpush3.bf16.msra.mxu0 %v820_v15  ;;  %v194_v15 = vadd.f32 %v193_v3, %v192_v56  ;;  %v172_v42 = vadd.f32 %v171_v31, %v170_v10  ;;  %v114_v56 = vadd.f32 %v113_v47, %v97_v19  ;;  %v139_v13 = vrot.slane %v138_v58, 2 }
  0x62   :  { %727 = vmatprep.subr.bf16.mxu0 %v821_v23  ;;  %v135_v23 = vrot.slane %v134_v6, 1  ;;  %v184_v43 = vadd.f32 %v183_v33, %v182_v11  ;;  %v151_v26 = vrot.slane %v150_v60, 2  ;;  %v163_v1 = vrot.slane %v162_v61, 2 }
  0x63   :  { %v195_v34 = vrot.slane %v194_v15, 1  ;;  %v115_v19 = vrot.slane %v114_v56, 2  ;;  %764 = vmatpush3.bf16.msra.mxu1 %v829_v50  ;;  %v175_v2 = vrot.slane %v174_v62, 2  ;;  %v140_v18 = vadd.f32 %v139_v13, %v138_v58 }
  0x64   :  { %v136_v39 = vadd.f32 %v135_v23, %v134_v6  ;;  %765 = vmatprep.subr.bf16.mxu1 %v995_v0  ;;  %v152_v32 = vadd.f32 %v151_v26, %v150_v60  ;;  %v164_v3 = vadd.f32 %v163_v1, %v162_v61  ;;  %v186_v29 = vadd.f32 %v185_v8, %v109_v35  ;;  %v833_v60 = vld [vmem:[#allocation10] sm:$0xff]   ;;  %v834_v61 = vld [vmem:[#allocation10 + $0x8] sm:$0xff]  }
  0x65   :  { %728 = vmatpush3.bf16.msra.mxu0 %v822_v44  ;;  %v196_v44 = vadd.f32 %v195_v34, %v194_v15  ;;  %v116_v17 = vadd.f32 %v115_v19, %v114_v56  ;;  %v176_v4 = vadd.f32 %v175_v2, %v174_v62  ;;  %v141_v7 = vrot.slane %v140_v18, 1  ;;  %v835_v62 = vld [vmem:[#allocation10 + $0x10] sm:$0xff]   ;;  %v837_v1 = vld [vmem:[#allocation10 + $0x20] sm:$0xff]   ;;  %v838_v2 = vld [vmem:[#allocation10 + $0x28] sm:$0xff]  }
  0x66   :  { %729 = vmatprep.subr.bf16.mxu0 %v823_v45  ;;  %v208_v45 = vadd.f32 %v207_v36, %v206_v20  ;;  %v239_v46 = vsel %vm225_vm0, %v136_v39, %v124_v38  ;;  %v153_v11 = vrot.slane %v152_v32, 1  ;;  %v165_v15 = vrot.slane %v164_v3, 1 }
  0x67   :  { %v240_v51 = vsel %vm227_vm1, %v148_v40, %v239_v46  ;;  %v117_v5 = vrot.slane %v116_v17, 1  ;;  %766 = vmatpush3.bf16.msra.mxu1 %v830_v21  ;;  %v177_v20 = vrot.slane %v176_v4, 1  ;;  %v142_v27 = vadd.f32 %v141_v7, %v140_v18 }
  0x68   :  { %v241_v55 = vsel %vm229_vm2, %v160_v41, %v240_v51  ;;  %767 = vmatprep.subr.bf16.mxu1 %v995_v0  ;;  %v154_v31 = vadd.f32 %v153_v11, %v152_v32  ;;  %v166_v33 = vadd.f32 %v165_v15, %v164_v3  ;;  %v197_v34 = vrot.slane %v111_v37, 4 }
  0x69   :  { %730 = vmatpush3.bf16.msra.mxu0 %v824_v63  ;;  %v242_v59 = vsel %vm231_vm3, %v172_v42, %v241_v55  ;;  %v127_v63 = vrot.slane %v126_v57, 2  ;;  %v118_v22 = vadd.f32 %v117_v5, %v116_v17  ;;  %v187_v36 = vrot.slane %v186_v29, 2  ;;  %v840_v17 = vld [vmem:[#allocation10 + $0x38] sm:$0xff]  }
  0x6a   :  { %775 = vmatprep.subr.bf16.mxu0 %v995_v0  ;;  %v243_v12 = vsel %vm233_vm4, %v184_v43, %v242_v59  ;;  %v178_v39 = vadd.f32 %v177_v20, %v176_v4  ;;  %v198_v40 = vadd.f32 %v197_v34, %v111_v37  ;;  %v541_v59 = vstv %s1225_s4 }
  0x6b   :  { %v244_v14 = vsel %vm235_vm5, %v196_v44, %v243_v12  ;;  %v128_v28 = vadd.f32 %v127_v63, %v126_v57  ;;  %768 = vmatpush3.bf16.msra.mxu1 %v831_v9  ;;  %v188_v24 = vadd.f32 %v187_v36, %v186_v29  ;;  %841 = vrcp.f32 %v541_v59  ;;  %v836_v12 = vld [vmem:[#allocation10 + $0x18] sm:$0xff]  }
  0x6c   :  { %v245_v16 = vsel %vm237_vm6, %v208_v45, %v244_v14  ;;  %769 = vmatprep.subr.bf16.mxu1 %v995_v0  ;;  %v199_v42 = vrot.slane %v198_v40, 2 }
  0x6d   :  { %v258_v30 = vmul.f32 0.25, %v245_v16  ;;  %v129_v6 = vrot.slane %v128_v28, 1  ;;  %v189_v44 = vrot.slane %v188_v24, 1  ;;  %v839_v16 = vld [vmem:[#allocation10 + $0x30] sm:$0xff]  }
  0x6e   :  { %v200_v45 = vadd.f32 %v199_v42, %v198_v40 }
  0x6f   :  { %v260_v10 = vpack.c.bf16 %v258_v30, %v258_v30  ;;  %v130_v23 = vadd.f32 %v129_v6, %v128_v28  ;;  %v190_v47 = vadd.f32 %v189_v44, %v188_v24  ;;  %770 = vmatpush3.bf16.msra.mxu1 %v832_v52 }
  0x70   :  { %v201_v48 = vrot.slane %v200_v45, 1 }
  0x71   :  { %421 = vmatprep.mubr.bf16.mxu0 %v260_v10  ;;  %v226_v38 = vsel %vm225_vm0, %v130_v23, %v118_v22 }
  0x72   :  { %v228_v41 = vsel %vm227_vm1, %v142_v27, %v226_v38  ;;  %v202_v25 = vadd.f32 %v201_v48, %v200_v45 }
  0x73   :  { %v230_v35 = vsel %vm229_vm2, %v154_v31, %v228_v41 }
  0x74   :  { %v232_v43 = vsel %vm231_vm3, %v166_v33, %v230_v35 }
  0x75   :  { %v234_v46 = vsel %vm233_vm4, %v178_v39, %v232_v43  ;;  %v842_v19 = vpop.eup %841 }
  0x76   :  { %v236_v49 = vsel %vm235_vm5, %v190_v47, %v234_v46  ;;  %795 = vpush %v842_v19 }
  0x77   :  { %v238_v37 = vsel %vm237_vm6, %v202_v25, %v236_v49 }
  0x78   :  { %v257_v50 = vmul.f32 0.25, %v238_v37 }
  0x7a   :  { %v259_v51 = vpack.c.bf16 %v257_v50, %v257_v50 }
  0x7c   :  { %422 = vmatmul.mubr.bf16.vlgmr.msra.gmra.mrb[0].mxu0 %v259_v51 }
  0x7d   :  { %791 = vmatprep.mubr.msk.bf16.mxu0 %vm996_vm7, %v995_v0  ;;  %776 = vmatpush3.bf16.msra.mxu0 %v833_v60 }
  0x7e   :  { %777 = vmatprep.subr.bf16.mxu0 %v995_v0 }
  0x81   :  { %778 = vmatpush3.bf16.msra.mxu0 %v834_v61 }
  0x82   :  { %779 = vmatprep.subr.bf16.mxu0 %v995_v0 }
  0x85   :  { %780 = vmatpush3.bf16.msra.mxu0 %v835_v62 }
  0x86   :  { %781 = vmatprep.subr.bf16.mxu0 %v995_v0 }
  0x89   :  { %782 = vmatpush3.bf16.msra.mxu0 %v836_v12 }
  0x8a   :  { %783 = vmatprep.subr.bf16.mxu0 %v995_v0 }
  0x8d   :  { %784 = vmatpush3.bf16.msra.mxu0 %v837_v1 }
  0x8e   :  { %785 = vmatprep.subr.bf16.mxu0 %v995_v0 }
  0x91   :  { %786 = vmatpush3.bf16.msra.mxu0 %v838_v2 }
  0x92   :  { %787 = vmatprep.subr.bf16.mxu0 %v995_v0 }
  0x95   :  { %788 = vmatpush3.bf16.msra.mxu0 %v839_v16 }
  0x96   :  { %789 = vmatprep.subr.bf16.mxu0 %v995_v0 }
  0x99   :  { %790 = vmatpush3.bf16.msra.mxu0 %v840_v17 }
  0xa7   :  { %s796_s4 = spop %795 }
  0xa8   :  { %v544_v30 = vstv %s796_s4 }
 0x14f   :  { %v731_v53 = vpop.f32.mrb[0].mxu0 }
 0x150   :  { %v732_v54 = vpop.f32.mrb[1].mxu0 }
 0x151   :  { %v733_v55 = vadd.f32 %v732_v54, %v731_v53  ;;  %v734_v56 = vpop.f32.mrb[2].mxu0 }
 0x152   :  { %v735_v57 = vpop.f32.mrb[3].mxu0 }
 0x153   :  { %v429_v58 = vpack.c.bf16 %v733_v55, %v733_v55 }
 0x155   :  { %772 = vmatmul.mubr.bf16.vlgmr.msra.gmra.mrb[0].mxu1 %v429_v58 }
 0x228   :  { %v528_v63 = vpop.f32.mrb[0].mxu1 }
 0x229   :  { %v773_v13 = vpop.f32.mrb[1].mxu1  ;;  %v534_v21 = vmul.f32 %v528_v63, %v528_v63 }
 0x22a   :  { %v531_v14 = vpop.f32.mrb[2].mxu1 }
 0x22b   :  { %v774_v26 = vpop.f32.mrb[3].mxu1  ;;  %535 = vadd.xlane.f32.xlu0 %v534_v21 }
 0x2b8   :  { %v536_v28 = vpop.xlane.xlu0 %535 }
 0x2b9   :  { %843 = vrsqrt.f32 %v536_v28 }
 0x2c3   :  { %v844_v18 = vpop.eup %843 }
 0x2c4   :  { %v538_v32 = vmul.f32 %v844_v18, %v528_v63 }
 0x2c6   :  { %v545_v3 = vmul.f32 %v544_v30, %v538_v32  ;;  %539 = vst [vmem:[#allocation13] sm:$0xff] %v538_v32 }
 0x2c8   :  { %v546_v4 = vpack.c.bf16 %v545_v3, %v545_v3 }
 0x2ca   :  { %792 = vmatmul.mubr.bf16.vlgmr.msra.gmra.mrb[4].mxu0 %v546_v4 }
 0x2cb   :  { %944 = shalt.err (!%p941_p8)
}
 0x2cc   :  { %s945_s27 = scalar_lea.hbm %s1227_s6, 128 }
 0x2cd   :  { %p946_p9 = scmp.ne.s32.totalorder %s1227_s6, %s945_s27  ;;  %p949_p10 = scmp.lt.u32.totalorder %s945_s27, %s1227_s6 }
 0x2cf   :  { %p951_p11 = pnand %p949_p10, %p946_p9 }
 0x2d1   :  { %954 = shalt.err (!%p951_p11)
}
 0x2d2   :  { %671 = dma.vmem_to_hbm [thread:$0]  %s669_s23, 128, %s1227_s6, [#allocation14]  }
 0x2d3   :  { %s998_s13 = smov [#allocation12]  }
 0x2d4   :  { %s658_s0 = sshll.u32 %s998_s13, 4  ;;  %s659_s0 = int_to_ptr.vmem [resolvable:$true] %s658_s0 }
 0x2d5   :  { %s955_s12 = scalar_lea.vmem %s659_s0, 128  ;;  %p960_p13 = scmp.lt.s32.totalorder %s659_s0, %s659_s0 }
 0x2d6   :  { %p956_p12 = scmp.ne.s32.totalorder %s659_s0, %s955_s12  ;;  %p961_p0 = scmp.lt.s32.totalorder %s955_s12, %s955_s12 }
 0x2d8   :  { %p962_p1 = por %p961_p0, %p960_p13 }
 0x2da   :  { %p963_p2 = pnand %p962_p1, %p956_p12 }
 0x39d   :  { %v645_v0 = vpop.f32.mrb[4].mxu0 }
 0x39e   :  { %651 = vst [vmem:[#allocation12] sm:$0xff] %v645_v0  ;;  %v793_v5 = vpop.f32.mrb[5].mxu0 }
 0x39f   :  { %v648_v6 = vpop.f32.mrb[6].mxu0 }
 0x3a0   :  { %966 = shalt.err (!%p963_p2)
}
 0x3a1   :  { %s967_s16 = scalar_lea.hbm %s1226_s5, 128 }
 0x3a2   :  { %p968_p3 = scmp.ne.s32.totalorder %s1226_s5, %s967_s16  ;;  %p971_p4 = scmp.lt.u32.totalorder %s967_s16, %s1226_s5 }
 0x3a4   :  { %p973_p5 = pnand %p971_p4, %p968_p3 }
 0x3a6   :  { %976 = shalt.err (!%p973_p5)
}
 0x3a7   :  { %661 = dma.vmem_to_hbm [thread:$0]  %s659_s0, 128, %s1226_s5, [#allocation6]   ;;  %v794_v7 = vpop.f32.mrb[7].mxu0 }
 0x3a8   :  { %983 = dma.done.wait [#allocation6], 128  }
 0x3a9   :  { %984 = vsyncadd [#allocation6], 4294967168 }
 0x3aa   :  { %985 = dma.done.wait [#allocation14], 128  }
 0x3ab   :  { %986 = vsyncadd [#allocation14], 4294967168 }
 0x3ac   :  { %678 = vsyncpa [#allocation5], 1 }
 0x3ad   :  { %679 = vsyncpa [#allocation8], 1 }
 0x3ae   :  { %680 = vsyncpa [#allocation11], 1 }
 0x3af   :  { %681 = vsyncpa [#allocation6], 1 }
 0x3b0   :  { %682 = vsyncpa [#allocation14], 1 }

</bundles_post_ra>
